<compile_context>
chip_gen: v7x
topology: tpu7x:2x2x1
jax: 0.10.0
libtpu: 0.0.40
codegen_flags: <defaults>
</compile_context>

<pallas_src>
import functools

import jax
import jax.numpy as jnp
from jax.experimental import pallas as pl
from jax.experimental.pallas import tpu as pltpu


def _round_up(x: int, m: int) -> int:
    return (x + m - 1) // m * m


def _qnetwork_kernel(x_ref, w1_ref, b1_ref, w2_ref, b2_ref, w3_ref, b3_ref, out_ref):
    """One batch tile: fc1 -> relu -> fc2 -> relu -> fc3 (all f32, f32 accumulate)."""
    x = x_ref[...]                                                     # (TB, S) f32
    h1 = jnp.maximum(
        jnp.dot(x, w1_ref[...], preferred_element_type=jnp.float32) + b1_ref[...], 0.0)
    h2 = jnp.maximum(
        jnp.dot(h1, w2_ref[...], preferred_element_type=jnp.float32) + b2_ref[...], 0.0)
    out = jnp.dot(h2, w3_ref[...], preferred_element_type=jnp.float32) + b3_ref[...]
    out_ref[...] = out.astype(out_ref.dtype)                          # (TB, A) narrow store


@functools.partial(jax.jit, static_argnames=("block_batch",))
def qnetwork_forward(state, w1, b1, w2, b2, w3, b3, *, block_batch=2048):
    """state: (B, state_size) f32; weights stored (in, out); biases (1, out)."""
    batch, state_size = state.shape
    fc1_units = w1.shape[1]
    fc2_units = w2.shape[1]
    action_size = w3.shape[1]

    # Batch tile: big (default 2048, sweep 1024-8192), capped to the 8-aligned batch
    # for tiny inputs.  For batches that would otherwise fit one tile but are large
    # enough to matter, force >= 2 grid steps so both v7x TensorCores get work.
    tb = min(block_batch, _round_up(batch, 8))
    if batch > 1024 and pl.cdiv(batch, tb) < 2:
        tb = _round_up(pl.cdiv(batch, 2), 8)

    grid = (pl.cdiv(batch, tb),)
    resident = lambda i: (0, 0)  # weights/biases: same block every step -> VMEM resident

    # Honest (de-padded) advisory cost estimate.
    flops = 2 * batch * (state_size * fc1_units + fc1_units * fc2_units
                         + fc2_units * action_size)
    bytes_accessed = 4 * (state.size + batch * action_size
                          + w1.size + w2.size + w3.size
                          + b1.size + b2.size + b3.size)

    return pl.pallas_call(
        _qnetwork_kernel,
        out_shape=jax.ShapeDtypeStruct((batch, action_size), jnp.float32),
        grid=grid,
        in_specs=[
            pl.BlockSpec((tb, state_size), lambda i: (i, 0)),   # x: tiled over batch
            pl.BlockSpec((state_size, fc1_units), resident),    # w1
            pl.BlockSpec((1, fc1_units), resident),             # b1
            pl.BlockSpec((fc1_units, fc2_units), resident),     # w2
            pl.BlockSpec((1, fc2_units), resident),             # b2
            pl.BlockSpec((fc2_units, action_size), resident),   # w3
            pl.BlockSpec((1, action_size), resident),           # b3
        ],
        out_specs=pl.BlockSpec((tb, action_size), lambda i: (i, 0)),
        compiler_params=pltpu.CompilerParams(
            dimension_semantics=("parallel",),                  # megacore: shard batch tiles
        ),
        cost_estimate=pl.CostEstimate(
            flops=flops, transcendentals=0, bytes_accessed=bytes_accessed),
    )(state, w1, b1, w2, b2, w3, b3)


def init_linear_params(key, in_features, out_features):
    """Deterministic init mimicking PyTorch nn.Linear: U(-1/sqrt(fan_in), 1/sqrt(fan_in))."""
    kw, kb = jax.random.split(key)
    bound = 1.0 / jnp.sqrt(jnp.float32(in_features))
    # weight stored as (in_features, out_features) so the kernel does x @ W
    w = jax.random.uniform(kw, (in_features, out_features), jnp.float32, -bound, bound)
    b = jax.random.uniform(kb, (1, out_features), jnp.float32, -bound, bound)
    return w, b


def reference_forward(state, w1, b1, w2, b2, w3, b3):
    hp = jax.lax.Precision.HIGHEST
    h1 = jnp.maximum(jnp.dot(state, w1, precision=hp) + b1, 0.0)
    h2 = jnp.maximum(jnp.dot(h1, w2, precision=hp) + b2, 0.0)
    return jnp.dot(h2, w3, precision=hp) + b3


if __name__ == "__main__":
    # Small shapes consistent with the module's constructor defaults.
    batch = 2
    state_size = 8
    action_size = 4
    fc1_units = 24
    fc2_units = 34

    key = jax.random.PRNGKey(0)
    k_x, k1, k2, k3 = jax.random.split(key, 4)

    state = jax.random.normal(k_x, (batch, state_size), jnp.float32)
    w1, b1 = init_linear_params(k1, state_size, fc1_units)
    w2, b2 = init_linear_params(k2, fc1_units, fc2_units)
    w3, b3 = init_linear_params(k3, fc2_units, action_size)

    out = qnetwork_forward(state, w1, b1, w2, b2, w3, b3)
    out = jax.block_until_ready(out)
    assert out.shape == (batch, action_size)
    ref = reference_forward(state, w1, b1, w2, b2, w3, b3)
    assert jnp.allclose(out, ref, atol=2e-2, rtol=2e-2), (out, ref)

    # Also exercise a multi-step grid with a ragged final batch tile.
    batch2 = 1000
    state2 = jax.random.normal(jax.random.PRNGKey(1), (batch2, state_size), jnp.float32)
    out2 = qnetwork_forward(state2, w1, b1, w2, b2, w3, b3, block_batch=256)
    out2 = jax.block_until_ready(out2)
    assert out2.shape == (batch2, action_size)
    ref2 = reference_forward(state2, w1, b1, w2, b2, w3, b3)
    assert jnp.allclose(out2, ref2, atol=2e-2, rtol=2e-2)

    print("KERNEL_OK")
</pallas_src>

<mosaic_0001>
module attributes {stable_mosaic.version = 11 : i64} {
  func.func @_qnetwork_kernel(%arg0: i32, %arg1: memref<8x8xf32, #tpu.memory_space<vmem>>, %arg2: memref<8x24xf32, #tpu.memory_space<vmem>>, %arg3: memref<1x24xf32, #tpu.memory_space<vmem>>, %arg4: memref<24x34xf32, #tpu.memory_space<vmem>>, %arg5: memref<1x34xf32, #tpu.memory_space<vmem>>, %arg6: memref<34x4xf32, #tpu.memory_space<vmem>>, %arg7: memref<1x4xf32, #tpu.memory_space<vmem>>, %arg8: memref<8x4xf32, #tpu.memory_space<vmem>>) attributes {dimension_semantics = [#tpu.dimension_semantics<parallel>], iteration_bounds = array<i64: 1>, scalar_prefetch = 0 : i64, scratch_operands = 0 : i64, tpu.core_type = #tpu.core_type<tc>, window_params = [{transform_indices = @transform_0, window_bounds = array<i64: 8, 8>}, {pipeline_mode = #tpu.pipeline_mode<synchronous>, transform_indices = @transform_1, window_bounds = array<i64: 8, 24>}, {pipeline_mode = #tpu.pipeline_mode<synchronous>, transform_indices = @transform_2, window_bounds = array<i64: 1, 24>}, {pipeline_mode = #tpu.pipeline_mode<synchronous>, transform_indices = @transform_3, window_bounds = array<i64: 24, 34>}, {pipeline_mode = #tpu.pipeline_mode<synchronous>, transform_indices = @transform_4, window_bounds = array<i64: 1, 34>}, {pipeline_mode = #tpu.pipeline_mode<synchronous>, transform_indices = @transform_5, window_bounds = array<i64: 34, 4>}, {pipeline_mode = #tpu.pipeline_mode<synchronous>, transform_indices = @transform_6, window_bounds = array<i64: 1, 4>}, {transform_indices = @transform_7, window_bounds = array<i64: 8, 4>}]} {
    %c0 = arith.constant 0 : index
    %c0_0 = arith.constant 0 : index
    %0 = vector.load %arg1[%c0, %c0_0] : memref<8x8xf32, #tpu.memory_space<vmem>>, vector<8x8xf32>
    %c0_1 = arith.constant 0 : index
    %c0_2 = arith.constant 0 : index
    %1 = vector.load %arg2[%c0_1, %c0_2] : memref<8x24xf32, #tpu.memory_space<vmem>>, vector<8x24xf32>
    %cst = arith.constant dense<0.000000e+00> : vector<8x24xf32>
    %2 = tpu.matmul %0, %1, %cst {dimension_numbers = #tpu.dot_dimension_numbers<[1], [0], [0], [1], [0, 0, 1, 1], [], []>} : vector<8x8xf32>, vector<8x24xf32>, vector<8x24xf32> -> vector<8x24xf32>
    %c0_3 = arith.constant 0 : index
    %c0_4 = arith.constant 0 : index
    %3 = vector.load %arg3[%c0_3, %c0_4] : memref<1x24xf32, #tpu.memory_space<vmem>>, vector<1x24xf32>
    %4 = vector.broadcast %3 : vector<1x24xf32> to vector<8x24xf32>
    %5 = arith.addf %2, %4 : vector<8x24xf32>
    %cst_5 = arith.constant 0.000000e+00 : f32
    %6 = vector.broadcast %cst_5 : f32 to vector<8x24xf32>
    %7 = arith.maximumf %5, %6 : vector<8x24xf32>
    %c0_6 = arith.constant 0 : index
    %c0_7 = arith.constant 0 : index
    %8 = vector.load %arg4[%c0_6, %c0_7] : memref<24x34xf32, #tpu.memory_space<vmem>>, vector<24x34xf32>
    %cst_8 = arith.constant dense<0.000000e+00> : vector<8x34xf32>
    %9 = tpu.matmul %7, %8, %cst_8 {dimension_numbers = #tpu.dot_dimension_numbers<[1], [0], [0], [1], [0, 0, 1, 1], [], []>} : vector<8x24xf32>, vector<24x34xf32>, vector<8x34xf32> -> vector<8x34xf32>
    %c0_9 = arith.constant 0 : index
    %c0_10 = arith.constant 0 : index
    %10 = vector.load %arg5[%c0_9, %c0_10] : memref<1x34xf32, #tpu.memory_space<vmem>>, vector<1x34xf32>
    %11 = vector.broadcast %10 : vector<1x34xf32> to vector<8x34xf32>
    %12 = arith.addf %9, %11 : vector<8x34xf32>
    %cst_11 = arith.constant 0.000000e+00 : f32
    %13 = vector.broadcast %cst_11 : f32 to vector<8x34xf32>
    %14 = arith.maximumf %12, %13 : vector<8x34xf32>
    %c0_12 = arith.constant 0 : index
    %c0_13 = arith.constant 0 : index
    %15 = vector.load %arg6[%c0_12, %c0_13] : memref<34x4xf32, #tpu.memory_space<vmem>>, vector<34x4xf32>
    %cst_14 = arith.constant dense<0.000000e+00> : vector<8x4xf32>
    %16 = tpu.matmul %14, %15, %cst_14 {dimension_numbers = #tpu.dot_dimension_numbers<[1], [0], [0], [1], [0, 0, 1, 1], [], []>} : vector<8x34xf32>, vector<34x4xf32>, vector<8x4xf32> -> vector<8x4xf32>
    %c0_15 = arith.constant 0 : index
    %c0_16 = arith.constant 0 : index
    %17 = vector.load %arg7[%c0_15, %c0_16] : memref<1x4xf32, #tpu.memory_space<vmem>>, vector<1x4xf32>
    %18 = vector.broadcast %17 : vector<1x4xf32> to vector<8x4xf32>
    %19 = arith.addf %16, %18 : vector<8x4xf32>
    %c0_17 = arith.constant 0 : index
    %c0_18 = arith.constant 0 : index
    %20 = vector.load %arg8[%c0_17, %c0_18] : memref<8x4xf32, #tpu.memory_space<vmem>>, vector<8x4xf32>
    tpu.vector_store %arg8[%c0_17, %c0_18], %19 {strides = array<i32>} : memref<8x4xf32, #tpu.memory_space<vmem>>, vector<8x4xf32>,
    return
  }
  func.func @transform_0(%arg0: i32) -> (i32, i32) {
    %c0_i32 = arith.constant 0 : i32
    %c0_i32_0 = arith.constant 0 : i32
    return %arg0, %c0_i32 : i32, i32
  }
  func.func @transform_1(%arg0: i32) -> (i32, i32) {
    %c0_i32 = arith.constant 0 : i32
    %c0_i32_0 = arith.constant 0 : i32
    %c0_i32_1 = arith.constant 0 : i32
    return %c0_i32, %c0_i32_0 : i32, i32
  }
  func.func @transform_2(%arg0: i32) -> (i32, i32) {
    %c0_i32 = arith.constant 0 : i32
    %c0_i32_0 = arith.constant 0 : i32
    %c0_i32_1 = arith.constant 0 : i32
    return %c0_i32, %c0_i32_0 : i32, i32
  }
  func.func @transform_3(%arg0: i32) -> (i32, i32) {
    %c0_i32 = arith.constant 0 : i32
    %c0_i32_0 = arith.constant 0 : i32
    %c0_i32_1 = arith.constant 0 : i32
    return %c0_i32, %c0_i32_0 : i32, i32
  }
  func.func @transform_4(%arg0: i32) -> (i32, i32) {
    %c0_i32 = arith.constant 0 : i32
    %c0_i32_0 = arith.constant 0 : i32
    %c0_i32_1 = arith.constant 0 : i32
    return %c0_i32, %c0_i32_0 : i32, i32
  }
  func.func @transform_5(%arg0: i32) -> (i32, i32) {
    %c0_i32 = arith.constant 0 : i32
    %c0_i32_0 = arith.constant 0 : i32
    %c0_i32_1 = arith.constant 0 : i32
    return %c0_i32, %c0_i32_0 : i32, i32
  }
  func.func @transform_6(%arg0: i32) -> (i32, i32) {
    %c0_i32 = arith.constant 0 : i32
    %c0_i32_0 = arith.constant 0 : i32
    %c0_i32_1 = arith.constant 0 : i32
    return %c0_i32, %c0_i32_0 : i32, i32
  }
  func.func @transform_7(%arg0: i32) -> (i32, i32) {
    %c0_i32 = arith.constant 0 : i32
    %c0_i32_0 = arith.constant 0 : i32
    return %arg0, %c0_i32 : i32, i32
  }
}

</mosaic_0001>

<bundles_post_ra>
// kernel: qnetwork_forward.1
= control target key start
LH: loop header
LB: loop body
LE: loop exit
PB: predicated region body
PF: predicated region fallthrough
CT: control target
= control target key end

     0   :  { %12 = vsyncpa [#allocation3], 0  ;;  %v389_v2 = vmov 0.0   ;;  %vm390_vm0 = vmmov 0   ;;  %vm36_vm1 = vcmask 64512   ;;  %v391_v6 = vmov 0.0|0.0   ;;  %s486_s0 = inlined_call_operand.vmem [shape: f32[2,8], index: 0, kind: input, shape index: {}]   ;;  %s487_s1 = inlined_call_operand.vmem [shape: f32[8,24], index: 1, kind: input, shape index: {}]   ;;  %s488_s2 = inlined_call_operand.vmem [shape: f32[1,24], index: 2, kind: input, shape index: {}]   ;;  %s489_s3 = inlined_call_operand.vmem [shape: f32[24,34], index: 3, kind: input, shape index: {}]   ;;  %s490_s4 = inlined_call_operand.vmem [shape: f32[1,34], index: 4, kind: input, shape index: {}]   ;;  %s491_s5 = inlined_call_operand.vmem [shape: f32[34,4], index: 5, kind: input, shape index: {}]   ;;  %s492_s6 = inlined_call_operand.vmem [shape: f32[1,4], index: 6, kind: input, shape index: {}]   ;;  %s493_s7 = inlined_call_operand.hbm [shape: f32[2,4], index: 7, kind: output, shape index: {}]  }
   0x1   :  { %v28_v0 = vld [vmem:[%s487_s1] sm:$0xff]  ;;  %323 = vmatprep.subr.mxu1 %v389_v2  ;;  %325 = vmatprep.mubr.msk.f32.mxu1 %vm390_vm0, %v389_v2  ;;  %v112_v4 = vld [vmem:[%s489_s3 + $0x8] sm:$0xff]  ;;  %v113_v7 = vld [vmem:[%s489_s3 + $0x10] sm:$0xff]  ;;  %vm121_vm2 = vcmask 195584   ;;  %vm212_vm3 = vcmask 1041408   ;;  %vm208_vm4 = vcmask 277504  }
   0x2   :  { %v27_v1 = vld [vmem:[%s486_s0] sm:$0xff]  ;;  %324 = vmatpush3.msra.mxu1 %v28_v0  ;;  %353 = vmatprep.subr.bf16.mxu0 %v391_v6  ;;  %v197_v9 = vld [vmem:[%s491_s5 + $0x8] sm:$0xff]  ;;  %v198_v16 = vld [vmem:[%s491_s5 + $0x10] sm:$0xff]  ;;  %vm286_vm5 = vcmask 31744  }
   0x3   :  { %v111_v3 = vld [vmem:[%s489_s3] sm:$0xff]  ;;  %326 = vmatmul.mubr.msk.f32.vlgmr.msra.gmra.mrb[0].mxu1 %vm36_vm1, %v27_v1  ;;  %350 = vmatprep.subr.bf16.mxu1 %v391_v6  ;;  %v199_v17 = vld [vmem:[%s491_s5 + $0x18] sm:$0xff] }
   0x4   :  { %v351_v5 = vpack.c.bf16 %v112_v4, %v111_v3  ;;  %334 = vmatprep.mubr.msk.f32.mxu1 %vm390_vm0, %v389_v2  ;;  %347 = vmatprep.mubr.msk.f32.mxu0 %vm390_vm0, %v389_v2  ;;  %v196_v8 = vld [vmem:[%s491_s5] sm:$0xff]  ;;  %v357_v18 = vpack.c.bf16 %v199_v17, %v198_v16 }
   0x5   :  { %v354_v10 = vpack.c.bf16 %v197_v9, %v196_v8  ;;  %v304_v11 = vld [vmem:[%s488_s2] ss:$0 sm:$0xff] }
   0x6   :  { %352 = vmatpush3.bf16.msra.mxu1 %v351_v5  ;;  %v200_v19 = vld [vmem:[%s491_s5 + $0x20] sm:$0x3] }
   0x7   :  { %332 = vmatprep.subr.mxu1 %v389_v2  ;;  %355 = vmatpush3.bf16.msra.mxu0 %v354_v10  ;;  %v306_v20 = vld [vmem:[%s490_s4] ss:$0 sm:$0xff] }
   0x8   :  { %356 = vmatprep.subr.bf16.mxu0 %v391_v6  ;;  %v308_v25 = vld [vmem:[%s492_s6] ss:$0 sm:$0xff] }
   0xa   :  { %333 = vmatpush3.msra.mxu1 %v113_v7 }
   0xb   :  { %358 = vmatpush3.bf16.msra.mxu0 %v357_v18 }
   0xc   :  { %345 = vmatprep.subr.mxu0 %v389_v2 }
   0xf   :  { %346 = vmatpush3.msk.msra.mxu0 %vm212_vm3, %v200_v19 }
  0xd6   :  { %v106_v12 = vpop.f32.mrb[0].mxu1 }
  0xd7   :  { %v107_v13 = vadd.f32 %v304_v11, %v106_v12  ;;  %v327_v14 = vpop.f32.mrb[1].mxu1 }
  0xd9   :  { %v110_v15 = vmax.f32 %v107_v13, 0.0 }
  0xdb   :  { %335 = vmatmul.mubr.msk.f32.vlgmr.msra.gmra.mrb[2].mxu1 %vm121_vm2, %v110_v15 }
 0x1ae   :  { %v191_v21 = vpop.f32.mrb[2].mxu1 }
 0x1af   :  { %v192_v22 = vadd.f32 %v306_v20, %v191_v21  ;;  %v336_v23 = vpop.f32.mrb[3].mxu1 }
 0x1b1   :  { %v195_v24 = vmax.f32 %v192_v22, 0.0 }
 0x1b3   :  { %348 = vmatmul.mubr.msk.f32.vlgmr.msra.gmra.mrb[0].mxu0 %vm208_vm4, %v195_v24 }
 0x286   :  { %v282_v26 = vpop.f32.mrb[0].mxu0 }
 0x287   :  { %v283_v27 = vadd.f32 %v308_v25, %v282_v26  ;;  %v349_v28 = vpop.f32.mrb[1].mxu0 }
 0x289   :  { %287 = vst.msk [vmem:[#allocation2] sm:$0xff] %vm286_vm5, %v283_v27 }
 0x28a   :  { %292 = vsyncadd [#allocation3], 96  ;;  %s392_s5 = smov [#allocation2]  }
 0x28b   :  { %s293_s23 = sshll.u32 %s392_s5, 4  ;;  %s294_s23 = int_to_ptr.vmem [resolvable:$true] %s293_s23 }
 0x28c   :  { %s365_s4 = scalar_lea.vmem %s294_s23, 32  ;;  %s369_s24 = scalar_lea.vmem %s294_s23, 128 }
 0x28d   :  { %p366_p0 = scmp.ne.s32.totalorder %s294_s23, %s365_s4  ;;  %p370_p1 = scmp.lt.s32.totalorder %s294_s23, %s294_s23 }
 0x28e   :  { %p371_p2 = scmp.lt.s32.totalorder %s369_s24, %s365_s4 }
 0x290   :  { %p372_p3 = por %p371_p2, %p370_p1 }
 0x292   :  { %p373_p4 = pnand %p372_p3, %p366_p0 }
 0x294   :  { %376 = shalt.err (!%p373_p4)
}
 0x295   :  { %s377_s6 = scalar_lea.hbm %s493_s7, 32 }
 0x296   :  { %p378_p5 = scmp.ne.s32.totalorder %s493_s7, %s377_s6  ;;  %p381_p6 = scmp.lt.u32.totalorder %s377_s6, %s493_s7 }
 0x298   :  { %p383_p7 = pnand %p381_p6, %p378_p5 }
 0x29a   :  { %386 = shalt.err (!%p383_p7)
}
 0x29b   :  { %s393_s8 = smov 32   ;;  %s394_s0 = smov 2  }
 0x29c   :  { %299 = dma.vmem_to_hbm [thread:$0]  %s294_s23, 32, %s493_s7, [#allocation3], %s393_s8, %s393_s8, %s394_s0  }
 0x29d   :  { %387 = dma.done.wait [#allocation3], 128  }
 0x29e   :  { %388 = vsyncadd [#allocation3], 4294967168 }
 0x29f   :  { %303 = vsyncpa [#allocation3], 1 }

</bundles_post_ra>
